<compile_context>
chip_gen: v7x
topology: tpu7x:2x2x1
jax: 0.10.0
libtpu: 0.0.40
codegen_flags: <defaults>
</compile_context>

<pallas_src>
import functools

import jax
import jax.numpy as jnp
from jax.experimental import pallas as pl
from jax.experimental.pallas import tpu as pltpu

# (fan_in, fan_out) of fc1..fc7 in the PyTorch module.
LAYER_DIMS = [(392, 150), (150, 50), (50, 50), (50, 20), (20, 20), (20, 10), (10, 2)]
# fan_out padded to lane-dense widths (multiples of 128).
OUT_PAD = [256, 128, 128, 128, 128, 128, 128]
IN_PAD = [392] + OUT_PAD[:-1]
OUT_WIDTH = OUT_PAD[-1]            # lane-dense output width; logits live in [:, :2]


def _round_up(x, m):
    return (x + m - 1) // m * m


def _mlp_kernel(x_ref, w1_ref, w2_ref, wk_ref, b_ref, o_ref):
    """One batch tile of the full forward pass (all weights VMEM-resident).

    x_ref : (TB, 392)     f32   raw input rows (cast to bf16 in-kernel)
    w1_ref: (392, 256)    bf16  fc1 (out zero-padded 150 -> 256)
    w2_ref: (256, 128)    bf16  fc2 (in padded 150 -> 256, out 50 -> 128)
    wk_ref: (5, 128, 128) bf16  fc3, fc4, fc5, fc6, fc7 (all padded to 128x128)
    b_ref : (8, 256)      f32   row i = bias of layer i, zero padded
    o_ref : (TB, 128)     bf16  logits in columns [0, 2)
    """
    f32 = jnp.float32
    bf16 = jnp.bfloat16

    x = x_ref[...].astype(bf16)        # fold the cast into the kernel (VPU slack)

    # fc1 + relu  -> (TB, 256)
    h = jnp.dot(x, w1_ref[...], preferred_element_type=f32)
    h = jnp.maximum(h + b_ref[0:1, :], 0.0).astype(bf16)

    # fc2 + relu  -> (TB, 128)
    h = jnp.dot(h, w2_ref[...], preferred_element_type=f32)
    h = jnp.maximum(h + b_ref[1:2, 0:128], 0.0).astype(bf16)

    # fc3, fc4, fc5, fc5 (shared weights, applied twice), fc6 -- all with relu.
    for w_idx, b_row in ((0, 2), (1, 3), (2, 4), (2, 4), (3, 5)):
        h = jnp.dot(h, wk_ref[w_idx], preferred_element_type=f32)
        h = jnp.maximum(h + b_ref[b_row:b_row + 1, 0:128], 0.0).astype(bf16)

    # fc7: no relu.
    h = jnp.dot(h, wk_ref[4], preferred_element_type=f32) + b_ref[6:7, 0:128]
    o_ref[...] = h.astype(o_ref.dtype)


def init_params(key):
    """PyTorch-default-like init: U(-1/sqrt(fan_in)); weights stored as (in, out)."""
    params = []
    for (fan_in, fan_out) in LAYER_DIMS:
        key, kw, kb = jax.random.split(key, 3)
        bound = 1.0 / jnp.sqrt(jnp.float32(fan_in))
        w = jax.random.uniform(kw, (fan_in, fan_out), jnp.float32, -bound, bound)
        b = jax.random.uniform(kb, (1, fan_out), jnp.float32, -bound, bound)
        params.append((w, b))
    return params


def pack_params(params):
    """Zero-pad each layer to lane-dense widths, cast weights to bf16, pack buffers."""
    padded_ws = []
    b_buf = jnp.zeros((8, 256), jnp.float32)
    for i, ((w, b), ip, op) in enumerate(zip(params, IN_PAD, OUT_PAD)):
        fan_in, fan_out = w.shape
        wp = jnp.zeros((ip, op), jnp.float32).at[:fan_in, :fan_out].set(w)
        padded_ws.append(wp.astype(jnp.bfloat16))
        b_buf = b_buf.at[i, :fan_out].set(b[0])
    w1 = padded_ws[0]                       # (392, 256) bf16
    w2 = padded_ws[1]                       # (256, 128) bf16
    wk = jnp.stack(padded_ws[2:], axis=0)   # (5, 128, 128) bf16
    return (w1, w2, wk, b_buf)


@functools.partial(jax.jit, static_argnames=("batch_tile",))
def linear_baseline_forward(x_nchw, packed, batch_tile=None):
    """x_nchw: (B, 2, 14, 14) float32 -> logits (B, 2) float32."""
    w1, w2, wk, b_buf = packed
    B = x_nchw.shape[0]
    x = x_nchw.reshape(B, -1)                # Flatten(start_dim=1); free bitcast, stays f32
    in_dim = x.shape[1]

    if batch_tile is None:
        # Large tiles amortize the ~0.35us/step grid overhead; the cdiv(B, 2) clamp
        # keeps >= 2 grid steps for large B so the "parallel" axis can shard over
        # both v7x TensorCores.  ~1.8 KB/row of double-buffered tile => TB=1024 is
        # well inside every generation's default scoped-VMEM budget.
        batch_tile = min(1024, _round_up(-(-B // 2), 16))
    tb = max(16, _round_up(batch_tile, 16))
    grid = (pl.cdiv(B, tb),)                 # no jnp.pad: masked tail tile instead

    out = pl.pallas_call(
        _mlp_kernel,
        out_shape=jax.ShapeDtypeStruct((B, OUT_WIDTH), jnp.bfloat16),
        grid=grid,
        in_specs=[
            pl.BlockSpec((tb, in_dim), lambda i: (i, 0)),     # pipelined batch tile
            pl.BlockSpec(w1.shape, lambda i: (0, 0)),         # weights stay resident
            pl.BlockSpec(w2.shape, lambda i: (0, 0)),
            pl.BlockSpec(wk.shape, lambda i: (0, 0, 0)),
            pl.BlockSpec(b_buf.shape, lambda i: (0, 0)),
        ],
        out_specs=pl.BlockSpec((tb, OUT_WIDTH), lambda i: (i, 0)),
        compiler_params=pltpu.CompilerParams(
            dimension_semantics=("parallel",)),
    )(x, w1, w2, wk, b_buf)
    return out[:, :2].astype(jnp.float32)


def _reference_forward(x_nchw, params):
    """Pure-JAX reference with the same bf16-operand / f32-accumulate numerics."""
    h = x_nchw.reshape(x_nchw.shape[0], -1).astype(jnp.bfloat16)
    ws = [w.astype(jnp.bfloat16) for (w, _) in params]
    bs = [b for (_, b) in params]
    order = [0, 1, 2, 3, 4, 4, 5]                      # fc5 applied twice
    for idx in order:
        y = jnp.dot(h, ws[idx], preferred_element_type=jnp.float32) + bs[idx]
        h = jnp.maximum(y, 0.0).astype(jnp.bfloat16)
    return jnp.dot(h, ws[6], preferred_element_type=jnp.float32) + bs[6]


if __name__ == "__main__":
    key = jax.random.PRNGKey(0)
    k_params, k_x = jax.random.split(key)

    params = init_params(k_params)
    packed = pack_params(params)

    # (B, 2, 14, 14) NCHW, consistent with fc1's 392 = 2*14*14 input features.
    B = 24                                   # not a tile multiple: exercises the masked tail tile
    x = jax.random.normal(k_x, (B, 2, 14, 14), dtype=jnp.float32)

    # Default tile heuristic (no forced tiny batch_tile): 2 grid steps here.
    logits = linear_baseline_forward(x, packed)
    logits = jax.block_until_ready(logits)

    ref = _reference_forward(x, params)
    assert logits.shape == (B, 2), logits.shape
    # bf16 operands + bf16 output writeback => ~1e-2-level deviation from f32 torch.
    assert jnp.allclose(logits, ref, atol=2e-2, rtol=2e-2), (
        float(jnp.max(jnp.abs(logits - ref))))

    print("KERNEL_OK")
</pallas_src>

<mosaic_0001>
module attributes {stable_mosaic.version = 11 : i64} {
  func.func @_mlp_kernel(%arg0: i32, %arg1: memref<16x392xf32, #tpu.memory_space<vmem>>, %arg2: memref<392x256xbf16, #tpu.memory_space<vmem>>, %arg3: memref<256x128xbf16, #tpu.memory_space<vmem>>, %arg4: memref<5x128x128xbf16, #tpu.memory_space<vmem>>, %arg5: memref<8x256xf32, #tpu.memory_space<vmem>>, %arg6: memref<16x128xbf16, #tpu.memory_space<vmem>>) attributes {dimension_semantics = [#tpu.dimension_semantics<parallel>], iteration_bounds = array<i64: 2>, scalar_prefetch = 0 : i64, scratch_operands = 0 : i64, tpu.core_type = #tpu.core_type<tc>, window_params = [{transform_indices = @transform_0, window_bounds = array<i64: 16, 392>}, {pipeline_mode = #tpu.pipeline_mode<synchronous>, transform_indices = @transform_1, window_bounds = array<i64: 392, 256>}, {pipeline_mode = #tpu.pipeline_mode<synchronous>, transform_indices = @transform_2, window_bounds = array<i64: 256, 128>}, {pipeline_mode = #tpu.pipeline_mode<synchronous>, transform_indices = @transform_3, window_bounds = array<i64: 5, 128, 128>}, {pipeline_mode = #tpu.pipeline_mode<synchronous>, transform_indices = @transform_4, window_bounds = array<i64: 8, 256>}, {transform_indices = @transform_5, window_bounds = array<i64: 16, 128>}]} {
    %c0 = arith.constant 0 : index
    %c0_0 = arith.constant 0 : index
    %0 = vector.load %arg1[%c0, %c0_0] : memref<16x392xf32, #tpu.memory_space<vmem>>, vector<16x392xf32>
    %1 = arith.truncf %0 : vector<16x392xf32> to vector<16x392xbf16>
    %c0_1 = arith.constant 0 : index
    %c0_2 = arith.constant 0 : index
    %2 = vector.load %arg2[%c0_1, %c0_2] : memref<392x256xbf16, #tpu.memory_space<vmem>>, vector<392x256xbf16>
    %cst = arith.constant dense<0.000000e+00> : vector<16x256xf32>
    %3 = tpu.matmul %1, %2, %cst {dimension_numbers = #tpu.dot_dimension_numbers<[1], [0], [0], [1], [0, 0, 1, 1], [], []>} : vector<16x392xbf16>, vector<392x256xbf16>, vector<16x256xf32> -> vector<16x256xf32>
    %c0_3 = arith.constant 0 : index
    %c0_4 = arith.constant 0 : index
    %4 = vector.load %arg5[%c0_3, %c0_4] : memref<8x256xf32, #tpu.memory_space<vmem>>, vector<1x256xf32>
    %5 = vector.broadcast %4 : vector<1x256xf32> to vector<16x256xf32>
    %6 = arith.addf %3, %5 : vector<16x256xf32>
    %cst_5 = arith.constant 0.000000e+00 : f32
    %7 = vector.broadcast %cst_5 : f32 to vector<16x256xf32>
    %8 = arith.maximumf %6, %7 : vector<16x256xf32>
    %9 = arith.truncf %8 : vector<16x256xf32> to vector<16x256xbf16>
    %c0_6 = arith.constant 0 : index
    %c0_7 = arith.constant 0 : index
    %10 = vector.load %arg3[%c0_6, %c0_7] : memref<256x128xbf16, #tpu.memory_space<vmem>>, vector<256x128xbf16>
    %cst_8 = arith.constant dense<0.000000e+00> : vector<16x128xf32>
    %11 = tpu.matmul %9, %10, %cst_8 {dimension_numbers = #tpu.dot_dimension_numbers<[1], [0], [0], [1], [0, 0, 1, 1], [], []>} : vector<16x256xbf16>, vector<256x128xbf16>, vector<16x128xf32> -> vector<16x128xf32>
    %c1 = arith.constant 1 : index
    %c0_9 = arith.constant 0 : index
    %12 = vector.load %arg5[%c1, %c0_9] : memref<8x256xf32, #tpu.memory_space<vmem>>, vector<1x128xf32>
    %13 = vector.broadcast %12 : vector<1x128xf32> to vector<16x128xf32>
    %14 = arith.addf %11, %13 : vector<16x128xf32>
    %cst_10 = arith.constant 0.000000e+00 : f32
    %15 = vector.broadcast %cst_10 : f32 to vector<16x128xf32>
    %16 = arith.maximumf %14, %15 : vector<16x128xf32>
    %17 = arith.truncf %16 : vector<16x128xf32> to vector<16x128xbf16>
    %c0_11 = arith.constant 0 : index
    %c0_12 = arith.constant 0 : index
    %c0_13 = arith.constant 0 : index
    %18 = vector.load %arg4[%c0_11, %c0_12, %c0_13] : memref<5x128x128xbf16, #tpu.memory_space<vmem>>, vector<1x128x128xbf16>
    %19 = vector.shape_cast %18 : vector<1x128x128xbf16> to vector<128x128xbf16>
    %cst_14 = arith.constant dense<0.000000e+00> : vector<16x128xf32>
    %20 = tpu.matmul %17, %19, %cst_14 {dimension_numbers = #tpu.dot_dimension_numbers<[1], [0], [0], [1], [0, 0, 1, 1], [], []>} : vector<16x128xbf16>, vector<128x128xbf16>, vector<16x128xf32> -> vector<16x128xf32>
    %c2 = arith.constant 2 : index
    %c0_15 = arith.constant 0 : index
    %21 = vector.load %arg5[%c2, %c0_15] : memref<8x256xf32, #tpu.memory_space<vmem>>, vector<1x128xf32>
    %22 = vector.broadcast %21 : vector<1x128xf32> to vector<16x128xf32>
    %23 = arith.addf %20, %22 : vector<16x128xf32>
    %cst_16 = arith.constant 0.000000e+00 : f32
    %24 = vector.broadcast %cst_16 : f32 to vector<16x128xf32>
    %25 = arith.maximumf %23, %24 : vector<16x128xf32>
    %26 = arith.truncf %25 : vector<16x128xf32> to vector<16x128xbf16>
    %c1_17 = arith.constant 1 : index
    %c0_18 = arith.constant 0 : index
    %c0_19 = arith.constant 0 : index
    %27 = vector.load %arg4[%c1_17, %c0_18, %c0_19] : memref<5x128x128xbf16, #tpu.memory_space<vmem>>, vector<1x128x128xbf16>
    %28 = vector.shape_cast %27 : vector<1x128x128xbf16> to vector<128x128xbf16>
    %cst_20 = arith.constant dense<0.000000e+00> : vector<16x128xf32>
    %29 = tpu.matmul %26, %28, %cst_20 {dimension_numbers = #tpu.dot_dimension_numbers<[1], [0], [0], [1], [0, 0, 1, 1], [], []>} : vector<16x128xbf16>, vector<128x128xbf16>, vector<16x128xf32> -> vector<16x128xf32>
    %c3 = arith.constant 3 : index
    %c0_21 = arith.constant 0 : index
    %30 = vector.load %arg5[%c3, %c0_21] : memref<8x256xf32, #tpu.memory_space<vmem>>, vector<1x128xf32>
    %31 = vector.broadcast %30 : vector<1x128xf32> to vector<16x128xf32>
    %32 = arith.addf %29, %31 : vector<16x128xf32>
    %cst_22 = arith.constant 0.000000e+00 : f32
    %33 = vector.broadcast %cst_22 : f32 to vector<16x128xf32>
    %34 = arith.maximumf %32, %33 : vector<16x128xf32>
    %35 = arith.truncf %34 : vector<16x128xf32> to vector<16x128xbf16>
    %c2_23 = arith.constant 2 : index
    %c0_24 = arith.constant 0 : index
    %c0_25 = arith.constant 0 : index
    %36 = vector.load %arg4[%c2_23, %c0_24, %c0_25] : memref<5x128x128xbf16, #tpu.memory_space<vmem>>, vector<1x128x128xbf16>
    %37 = vector.shape_cast %36 : vector<1x128x128xbf16> to vector<128x128xbf16>
    %cst_26 = arith.constant dense<0.000000e+00> : vector<16x128xf32>
    %38 = tpu.matmul %35, %37, %cst_26 {dimension_numbers = #tpu.dot_dimension_numbers<[1], [0], [0], [1], [0, 0, 1, 1], [], []>} : vector<16x128xbf16>, vector<128x128xbf16>, vector<16x128xf32> -> vector<16x128xf32>
    %c4 = arith.constant 4 : index
    %c0_27 = arith.constant 0 : index
    %39 = vector.load %arg5[%c4, %c0_27] : memref<8x256xf32, #tpu.memory_space<vmem>>, vector<1x128xf32>
    %40 = vector.broadcast %39 : vector<1x128xf32> to vector<16x128xf32>
    %41 = arith.addf %38, %40 : vector<16x128xf32>
    %cst_28 = arith.constant 0.000000e+00 : f32
    %42 = vector.broadcast %cst_28 : f32 to vector<16x128xf32>
    %43 = arith.maximumf %41, %42 : vector<16x128xf32>
    %44 = arith.truncf %43 : vector<16x128xf32> to vector<16x128xbf16>
    %c2_29 = arith.constant 2 : index
    %c0_30 = arith.constant 0 : index
    %c0_31 = arith.constant 0 : index
    %45 = vector.load %arg4[%c2_29, %c0_30, %c0_31] : memref<5x128x128xbf16, #tpu.memory_space<vmem>>, vector<1x128x128xbf16>
    %46 = vector.shape_cast %45 : vector<1x128x128xbf16> to vector<128x128xbf16>
    %cst_32 = arith.constant dense<0.000000e+00> : vector<16x128xf32>
    %47 = tpu.matmul %44, %46, %cst_32 {dimension_numbers = #tpu.dot_dimension_numbers<[1], [0], [0], [1], [0, 0, 1, 1], [], []>} : vector<16x128xbf16>, vector<128x128xbf16>, vector<16x128xf32> -> vector<16x128xf32>
    %c4_33 = arith.constant 4 : index
    %c0_34 = arith.constant 0 : index
    %48 = vector.load %arg5[%c4_33, %c0_34] : memref<8x256xf32, #tpu.memory_space<vmem>>, vector<1x128xf32>
    %49 = vector.broadcast %48 : vector<1x128xf32> to vector<16x128xf32>
    %50 = arith.addf %47, %49 : vector<16x128xf32>
    %cst_35 = arith.constant 0.000000e+00 : f32
    %51 = vector.broadcast %cst_35 : f32 to vector<16x128xf32>
    %52 = arith.maximumf %50, %51 : vector<16x128xf32>
    %53 = arith.truncf %52 : vector<16x128xf32> to vector<16x128xbf16>
    %c3_36 = arith.constant 3 : index
    %c0_37 = arith.constant 0 : index
    %c0_38 = arith.constant 0 : index
    %54 = vector.load %arg4[%c3_36, %c0_37, %c0_38] : memref<5x128x128xbf16, #tpu.memory_space<vmem>>, vector<1x128x128xbf16>
    %55 = vector.shape_cast %54 : vector<1x128x128xbf16> to vector<128x128xbf16>
    %cst_39 = arith.constant dense<0.000000e+00> : vector<16x128xf32>
    %56 = tpu.matmul %53, %55, %cst_39 {dimension_numbers = #tpu.dot_dimension_numbers<[1], [0], [0], [1], [0, 0, 1, 1], [], []>} : vector<16x128xbf16>, vector<128x128xbf16>, vector<16x128xf32> -> vector<16x128xf32>
    %c5 = arith.constant 5 : index
    %c0_40 = arith.constant 0 : index
    %57 = vector.load %arg5[%c5, %c0_40] : memref<8x256xf32, #tpu.memory_space<vmem>>, vector<1x128xf32>
    %58 = vector.broadcast %57 : vector<1x128xf32> to vector<16x128xf32>
    %59 = arith.addf %56, %58 : vector<16x128xf32>
    %cst_41 = arith.constant 0.000000e+00 : f32
    %60 = vector.broadcast %cst_41 : f32 to vector<16x128xf32>
    %61 = arith.maximumf %59, %60 : vector<16x128xf32>
    %62 = arith.truncf %61 : vector<16x128xf32> to vector<16x128xbf16>
    %c4_42 = arith.constant 4 : index
    %c0_43 = arith.constant 0 : index
    %c0_44 = arith.constant 0 : index
    %63 = vector.load %arg4[%c4_42, %c0_43, %c0_44] : memref<5x128x128xbf16, #tpu.memory_space<vmem>>, vector<1x128x128xbf16>
    %64 = vector.shape_cast %63 : vector<1x128x128xbf16> to vector<128x128xbf16>
    %cst_45 = arith.constant dense<0.000000e+00> : vector<16x128xf32>
    %65 = tpu.matmul %62, %64, %cst_45 {dimension_numbers = #tpu.dot_dimension_numbers<[1], [0], [0], [1], [0, 0, 1, 1], [], []>} : vector<16x128xbf16>, vector<128x128xbf16>, vector<16x128xf32> -> vector<16x128xf32>
    %c6 = arith.constant 6 : index
    %c0_46 = arith.constant 0 : index
    %66 = vector.load %arg5[%c6, %c0_46] : memref<8x256xf32, #tpu.memory_space<vmem>>, vector<1x128xf32>
    %67 = vector.broadcast %66 : vector<1x128xf32> to vector<16x128xf32>
    %68 = arith.addf %65, %67 : vector<16x128xf32>
    %69 = arith.truncf %68 : vector<16x128xf32> to vector<16x128xbf16>
    %c0_47 = arith.constant 0 : index
    %c0_48 = arith.constant 0 : index
    %70 = vector.load %arg6[%c0_47, %c0_48] : memref<16x128xbf16, #tpu.memory_space<vmem>>, vector<16x128xbf16>
    tpu.vector_store %arg6[%c0_47, %c0_48], %69 {strides = array<i32>} : memref<16x128xbf16, #tpu.memory_space<vmem>>, vector<16x128xbf16>,
    return
  }
  func.func @transform_0(%arg0: i32) -> (i32, i32) {
    %c0_i32 = arith.constant 0 : i32
    %c0_i32_0 = arith.constant 0 : i32
    return %arg0, %c0_i32 : i32, i32
  }
  func.func @transform_1(%arg0: i32) -> (i32, i32) {
    %c0_i32 = arith.constant 0 : i32
    %c0_i32_0 = arith.constant 0 : i32
    %c0_i32_1 = arith.constant 0 : i32
    return %c0_i32, %c0_i32_0 : i32, i32
  }
  func.func @transform_2(%arg0: i32) -> (i32, i32) {
    %c0_i32 = arith.constant 0 : i32
    %c0_i32_0 = arith.constant 0 : i32
    %c0_i32_1 = arith.constant 0 : i32
    return %c0_i32, %c0_i32_0 : i32, i32
  }
  func.func @transform_3(%arg0: i32) -> (i32, i32, i32) {
    %c0_i32 = arith.constant 0 : i32
    %c0_i32_0 = arith.constant 0 : i32
    %c0_i32_1 = arith.constant 0 : i32
    %c0_i32_2 = arith.constant 0 : i32
    return %c0_i32, %c0_i32_0, %c0_i32_1 : i32, i32, i32
  }
  func.func @transform_4(%arg0: i32) -> (i32, i32) {
    %c0_i32 = arith.constant 0 : i32
    %c0_i32_0 = arith.constant 0 : i32
    %c0_i32_1 = arith.constant 0 : i32
    return %c0_i32, %c0_i32_0 : i32, i32
  }
  func.func @transform_5(%arg0: i32) -> (i32, i32) {
    %c0_i32 = arith.constant 0 : i32
    %c0_i32_0 = arith.constant 0 : i32
    return %arg0, %c0_i32 : i32, i32
  }
}

</mosaic_0001>

<bundles_post_ra>
// kernel: linear_baseline_forward.1
= control target key start
LH: loop header
LB: loop body
LE: loop exit
PB: predicated region body
PF: predicated region fallthrough
CT: control target
= control target key end

     0   :  { %s2421_s18 = smov 0   ;;  %s2423_s19 = smov 0   ;;  %s2910_s0 = inlined_call_operand.vmem [shape: f32[24,392], index: 0, kind: input, shape index: {}]   ;;  %s2911_s1 = inlined_call_operand.vmem [shape: bf16[392,256], index: 1, kind: input, shape index: {}]   ;;  %s2912_s2 = inlined_call_operand.vmem [shape: bf16[256,128], index: 2, kind: input, shape index: {}]   ;;  %s2913_s3 = inlined_call_operand.vmem [shape: bf16[5,128,128], index: 3, kind: input, shape index: {}]   ;;  %s2914_s4 = inlined_call_operand.vmem [shape: f32[8,256], index: 4, kind: input, shape index: {}]   ;;  %s2915_s5 = inlined_call_operand.vmem [shape: bf16[24,128], index: 5, kind: output, shape index: {}]  }
   0x1   :  { %s2425_s20 = smov 0  }
   0x2 LB: > { %s2434_s21 = sadd.s32 4294967295, %s2355_s20   ;;  %s2436_s22 = sadd.s32 1, %s2355_s20   ;;  %s2355_s20 = sphi %s2425_s20, %s2919_s20   ;;  %s2351_s19 = sphi %s2423_s19, %s2918_s19   ;;  %s2347_s18 = sphi %s2421_s18, %s2917_s18  }
   0x3   : > { %s129_s23 = ssub.s32 %s2355_s20, %s2436_s22  ;;  %s132_s24 = sadd.s32 1, %s2351_s19 }
   0x4   : > { %p130_p0 = scmp.eq.s32.totalorder %s129_s23, 0  ;;  %p142_p1 = scmp.ne.s32.totalorder %s2351_s19, %s2347_s18 }
   0x5   : > { %p143_p2 = scmp.eq.s32.totalorder %s2434_s21, 1  ;;  %p1670_p3 = scmp.ge.s32.totalorder %s2355_s20, 1 }
   0x6   : > { %s2444_s25 = scalar_select %p130_p0, %s2351_s19, %s132_s24  }
   0x7   : > { %p2446_p4 = por %p143_p2, %p142_p1  ;;  %p199_p5 = scmp.lt.s32.totalorder %s2355_s20, 3 }
   0x9   : > { %p200_p6 = pnand %p1670_p3, %p199_p5 }
   0xa   : > { %v2171_v0 = vld [vmem:[%s2911_s1 + $0x4] ss:$8 sps:$4 sm:$0xff] (!%p200_p6)   ;;  %v2173_v1 = vld [vmem:[%s2911_s1] ss:$8 sps:$4 sm:$0xff] (!%p200_p6)   ;;  %v2174_v2 = vld [vmem:[%s2911_s1 + $0x14] ss:$8 sps:$4 sm:$0xff] (!%p200_p6)  }
   0xb   : > { %203 = sbr.rel (%p200_p6) target bundleno = 1924 (0x784), region = 40  ;;  %584 = vmatprep.subr.bf16.mxu0 (!%p200_p6), %v2171_v0  ;;  %v2176_v3 = vld [vmem:[%s2911_s1 + $0x10] ss:$8 sps:$4 sm:$0xff] (!%p200_p6)   ;;  %v2177_v4 = vld [vmem:[%s2911_s1 + $0x24] ss:$8 sps:$4 sm:$0xff] (!%p200_p6)   ;;  %s2466_s12 = sshll.u32 (!%p200_p6), %s2434_s21, 1 }
   0xc   : > { %585 = vmatpush1.bf16.msra.mxu0 (!%p200_p6), %v2173_v1  ;;  %v2179_v5 = vld [vmem:[%s2911_s1 + $0x20] ss:$8 sps:$4 sm:$0xff] (!%p200_p6)   ;;  %p238_p7 = scmp.lt.s32.totalorder (!%p200_p6), %s2466_s12, 2  ;;  %v2180_v6 = vld [vmem:[%s2911_s1 + $0x34] ss:$8 sps:$4 sm:$0xff] (!%p200_p6)   ;;  %vm573_vm0 = vcmask (!%p200_p6), 64512  }
   0xd   : > { %586 = vmatprep.subr.bf16.mxu0 (!%p200_p6), %v2174_v2  ;;  %v2182_v7 = vld [vmem:[%s2911_s1 + $0x30] ss:$8 sps:$4 sm:$0xff] (!%p200_p6)   ;;  %v2183_v8 = vld [vmem:[%s2911_s1 + $0x44] ss:$8 sps:$4 sm:$0xff] (!%p200_p6)   ;;  %v2185_v9 = vld [vmem:[%s2911_s1 + $0x40] ss:$8 sps:$4 sm:$0xff] (!%p200_p6)  }
   0xe   : > { %v2186_v10 = vld [vmem:[%s2911_s1 + $0x54] ss:$8 sps:$4 sm:$0xff] (!%p200_p6)   ;;  %v2188_v11 = vld [vmem:[%s2911_s1 + $0x50] ss:$8 sps:$4 sm:$0xff] (!%p200_p6)   ;;  %v2189_v12 = vld [vmem:[%s2911_s1 + $0x64] ss:$8 sps:$4 sm:$0xff] (!%p200_p6)  }
   0xf   : > { %v2191_v16 = vld [vmem:[%s2911_s1 + $0x60] ss:$8 sps:$4 sm:$0xff] (!%p200_p6)   ;;  %v2192_v17 = vld [vmem:[%s2911_s1 + $0x74] ss:$8 sps:$4 sm:$0xff] (!%p200_p6)   ;;  %v2194_v18 = vld [vmem:[%s2911_s1 + $0x70] ss:$8 sps:$4 sm:$0xff] (!%p200_p6)  }
  0x10   : > { %587 = vmatpush1.bf16.msra.mxu0 (!%p200_p6), %v2176_v3  ;;  %v2195_v19 = vld [vmem:[%s2911_s1 + $0x84] ss:$8 sps:$4 sm:$0xff] (!%p200_p6)   ;;  %v2197_v20 = vld [vmem:[%s2911_s1 + $0x80] ss:$8 sps:$4 sm:$0xff] (!%p200_p6)   ;;  %v2198_v21 = vld [vmem:[%s2911_s1 + $0x94] ss:$8 sps:$4 sm:$0xff] (!%p200_p6)  }
  0x11   : > { %588 = vmatprep.subr.bf16.mxu0 (!%p200_p6), %v2177_v4  ;;  %v2200_v22 = vld [vmem:[%s2911_s1 + $0x90] ss:$8 sps:$4 sm:$0xff] (!%p200_p6)   ;;  %v2201_v23 = vld [vmem:[%s2911_s1 + $0xa4] ss:$8 sps:$4 sm:$0xff] (!%p200_p6)   ;;  %v2203_v26 = vld [vmem:[%s2911_s1 + $0xa0] ss:$8 sps:$4 sm:$0xff] (!%p200_p6)  }
  0x12   : > { %s239_s23 = scalar_select %p238_p7, %s2466_s12, 2  ;;  %v2245_v24 = vld [vmem:[%s2912_s2 + $0x40] sm:$0xff]   ;;  %v2247_v27 = vld [vmem:[%s2912_s2 + $0x48] sm:$0xff]   ;;  %v2249_v29 = vld [vmem:[%s2912_s2 + $0x50] sm:$0xff]   ;;  %vm577_vm1 = vcmask 1043456   ;;  %vm2390_vm2 = vmmov 0  }
  0x13   : > { %v2246_v25 = vld [vmem:[%s2912_s2] sm:$0xff]   ;;  %1877 = vmatprep.subr.bf16.mxu1 %v2245_v24  ;;  %v2248_v28 = vld [vmem:[%s2912_s2 + $0x8] sm:$0xff]   ;;  %v2204_v30 = vld [vmem:[%s2911_s1 + $0xb4] ss:$8 sps:$4 sm:$0xff]  }
  0x14   : > { %589 = vmatpush1.bf16.msra.mxu0 %v2179_v5  ;;  %s1866_s30 = sshll.u32 %s239_s23, 5  ;;  %1878 = vmatpush3.bf16.msra.mxu1 %v2246_v25  ;;  %v2206_v31 = vld [vmem:[%s2911_s1 + $0xb0] ss:$8 sps:$4 sm:$0xff]   ;;  %v2207_v34 = vld [vmem:[%s2911_s1 + $0xc4] ss:$8 sps:$4 sm:$0xff]   ;;  %s229_s23 = sand.u32 1, %s2347_s18  }
  0x15   : > { %590 = vmatprep.subr.bf16.mxu0 %v2180_v6  ;;  %s2491_s10 = scalar_lea.vmem %s2910_s0, %s1866_s30  ;;  %1879 = vmatprep.subr.bf16.mxu1 %v2247_v27  ;;  %v2250_v32 = vld [vmem:[%s2912_s2 + $0x10] sm:$0xff]   ;;  %v2251_v33 = vld [vmem:[%s2912_s2 + $0x58] sm:$0xff]   ;;  %v2209_v35 = vld [vmem:[%s2911_s1 + $0xc0] ss:$8 sps:$4 sm:$0xff]   ;;  %s1671_s28 = sshll.u32 %s229_s23, 3 }
  0x16   : > { %v256_v13 = vld [vmem:[%s2491_s10 + $0x8] sm:$0xff]  ;;  %v2210_v36 = vld [vmem:[%s2911_s1 + $0xd4] ss:$8 sps:$4 sm:$0xff]   ;;  %v2253_v38 = vld [vmem:[%s2912_s2 + $0x60] sm:$0xff]   ;;  %s2866_s29 = scalar_lea.vmem [#allocation2], %s1671_s28   ;;  %s1457_s18 = ssub.s32 (%p2446_p4), 3, %s2466_s12 }
  0x17   : > { %v260_v14 = vld [vmem:[%s2491_s10 + $0x28] sm:$0xff]  ;;  %v2252_v37 = vld [vmem:[%s2912_s2 + $0x18] sm:$0xff]   ;;  %v2254_v39 = vld [vmem:[%s2912_s2 + $0x20] sm:$0xff]   ;;  %s1869_s30 = sshll.u32 (%p2446_p4), %s2434_s21, 3  ;;  %p1458_p8 = scmp.lt.s32.totalorder (%p2446_p4), %s1457_s18, 2 }
  0x18   : > { %591 = vmatpush1.bf16.msra.mxu0 %v2182_v7  ;;  %v264_v15 = vpack.c.bf16 %v260_v14, %v256_v13  ;;  %1880 = vmatpush3.bf16.msra.mxu1 %v2248_v28  ;;  %v2212_v40 = vld [vmem:[%s2911_s1 + $0xd0] ss:$8 sps:$4 sm:$0xff]   ;;  %v2255_v41 = vld [vmem:[%s2912_s2 + $0x68] sm:$0xff]   ;;  %v2216_v44 = vld [vmem:[%s2911_s1 + $0xf4] ss:$8 sps:$4 sm:$0xff]   ;;  %s2876_s8 = scalar_lea.vmem (%p2446_p4), %s2915_s5, %s1869_s30  }
  0x19   : > { %592 = vmatprep.subr.bf16.mxu0 %v2183_v8  ;;  %1881 = vmatprep.subr.bf16.mxu1 %v2249_v29  ;;  %v2213_v42 = vld [vmem:[%s2911_s1 + $0xe4] ss:$8 sps:$4 sm:$0xff]   ;;  %v2215_v43 = vld [vmem:[%s2911_s1 + $0xe0] ss:$8 sps:$4 sm:$0xff]   ;;  %v2218_v45 = vld [vmem:[%s2911_s1 + $0xf0] ss:$8 sps:$4 sm:$0xff]  }
  0x1a   : > { %616 = vmatprep.mubr.bf16.mxu0 %v264_v15  ;;  %v255_v46 = vld [vmem:[%s2491_s10] sm:$0xff]  ;;  %v258_v49 = vld [vmem:[%s2491_s10 + $0x18] sm:$0xff]  ;;  %v257_v7 = vld [vmem:[%s2491_s10 + $0x10] sm:$0xff] }
  0x1b   : > { %v259_v47 = vld [vmem:[%s2491_s10 + $0x20] sm:$0xff]  ;;  %v262_v50 = vld [vmem:[%s2491_s10 + $0x38] sm:$0xff]  ;;  %v261_v8 = vld [vmem:[%s2491_s10 + $0x30] sm:$0xff] }
  0x1c   : > { %593 = vmatpush1.bf16.msra.mxu0 %v2185_v9  ;;  %1882 = vmatpush3.bf16.msra.mxu1 %v2250_v32  ;;  %v2221_v48 = vld [vmem:[%s2911_s1 + $0x104] ss:$8 sps:$4 sm:$0xff]   ;;  %v2219_v51 = vld [vmem:[%s2911_s1 + $0x100] ss:$8 sps:$4 sm:$0xff]   ;;  %v263_v52 = vpack.c.bf16 %v259_v47, %v255_v46  ;;  %v2224_v53 = vld [vmem:[%s2911_s1 + $0x114] ss:$8 sps:$4 sm:$0xff]   ;;  %v266_v54 = vpack.c.bf16 %v262_v50, %v258_v49 }
  0x1d   : > { %594 = vmatprep.subr.bf16.mxu0 %v2186_v10  ;;  %1883 = vmatprep.subr.bf16.mxu1 %v2251_v33  ;;  %v2222_v55 = vld [vmem:[%s2911_s1 + $0x110] ss:$8 sps:$4 sm:$0xff]   ;;  %v2227_v56 = vld [vmem:[%s2911_s1 + $0x124] ss:$8 sps:$4 sm:$0xff]   ;;  %v2225_v57 = vld [vmem:[%s2911_s1 + $0x120] ss:$8 sps:$4 sm:$0xff]   ;;  %v265_v10 = vpack.c.bf16 %v261_v8, %v257_v7 }
  0x1e   : > { %v2230_v58 = vld [vmem:[%s2911_s1 + $0x134] ss:$8 sps:$4 sm:$0xff]   ;;  %v2228_v59 = vld [vmem:[%s2911_s1 + $0x130] ss:$8 sps:$4 sm:$0xff]   ;;  %v2233_v60 = vld [vmem:[%s2911_s1 + $0x144] ss:$8 sps:$4 sm:$0xff]  }
  0x1f   : > { %v2231_v61 = vld [vmem:[%s2911_s1 + $0x140] ss:$8 sps:$4 sm:$0xff]   ;;  %v2236_v62 = vld [vmem:[%s2911_s1 + $0x154] ss:$8 sps:$4 sm:$0xff]   ;;  %v2234_v63 = vld [vmem:[%s2911_s1 + $0x150] ss:$8 sps:$4 sm:$0xff]  }
  0x20   : > { %595 = vmatpush1.bf16.msra.mxu0 %v2188_v11  ;;  %1884 = vmatpush3.bf16.msra.mxu1 %v2252_v37  ;;  %v2239_v0 = vld [vmem:[%s2911_s1 + $0x164] ss:$8 sps:$4 sm:$0xff]   ;;  %v2237_v1 = vld [vmem:[%s2911_s1 + $0x160] ss:$8 sps:$4 sm:$0xff]   ;;  %v2242_v2 = vld [vmem:[%s2911_s1 + $0x174] ss:$8 sps:$4 sm:$0xff]  }
  0x21   : > { %596 = vmatprep.subr.bf16.mxu0 %v2189_v12  ;;  %1885 = vmatprep.subr.bf16.mxu1 %v2253_v38  ;;  %v315_v3 = vld [vmem:[%s2911_s1 + $0x180] sm:$0xff]  ;;  %v2240_v4 = vld [vmem:[%s2911_s1 + $0x170] ss:$8 sps:$4 sm:$0xff]   ;;  %v2256_v11 = vld [vmem:[%s2912_s2 + $0x28] sm:$0xff]  }
  0x22   : > { %v1724_v5 = vcombine.high %v315_v3, %v315_v3  ;;  %v1723_v6 = vcombine.low %v315_v3, %v315_v3  ;;  %v2257_v12 = vld [vmem:[%s2912_s2 + $0x70] sm:$0xff]   ;;  %v2259_v14 = vld [vmem:[%s2912_s2 + $0x78] sm:$0xff]   ;;  %v2261_v38 = vld [vmem:[%s2913_s3] sm:$0xff]  }
  0x23   : > { %v2258_v13 = vld [vmem:[%s2912_s2 + $0x30] sm:$0xff]   ;;  %v2260_v15 = vld [vmem:[%s2912_s2 + $0x38] sm:$0xff]   ;;  %v708_v47 = vld [vmem:[%s2914_s4 + $0x1] ss:$0 sm:$0xff] }
  0x24   : > { %597 = vmatpush1.bf16.msra.mxu0 %v2191_v16  ;;  %1886 = vmatpush3.bf16.msra.mxu1 %v2254_v39  ;;  %v579_v9 = vsel %vm577_vm1, %v1723_v6, 0  ;;  %v2389_v16 = vmov 0.0   ;;  %v2262_v39 = vld [vmem:[%s2913_s3 + $0x8] sm:$0xff]   ;;  %v2281_v6 = vld [vmem:[%s2913_s3 + $0xa0] sm:$0xff]  }
  0x25   : > { %598 = vmatprep.subr.bf16.mxu0 %v2192_v17  ;;  %1887 = vmatprep.subr.bf16.mxu1 %v2255_v41  ;;  %v318_v17 = vlaneseq  ;;  %v2264_v41 = vld [vmem:[%s2913_s3 + $0x18] sm:$0xff]   ;;  %v2278_v3 = vld [vmem:[%s2913_s3 + $0x88] sm:$0xff]   ;;  %v865_v8 = vld [vmem:[%s2914_s4 + $0x2] ss:$0 sm:$0xff] }
  0x26   : > { %v2282_v7 = vld [vmem:[%s2913_s3 + $0xa8] sm:$0xff]  }
  0x28   : > { %599 = vmatpush1.bf16.msra.mxu0 %v2194_v18  ;;  %1888 = vmatpush3.bf16.msra.mxu1 %v2256_v11  ;;  %v319_v18 = vshrl.u32 %v318_v17, 7 }
  0x29   : > { %600 = vmatprep.subr.bf16.mxu0 %v2195_v19  ;;  %1889 = vmatprep.subr.bf16.mxu1 %v2257_v12 }
  0x2a   : > { %v320_v19 = vsub.s32 0, %v319_v18 }
  0x2c   : > { %601 = vmatpush1.bf16.msra.mxu0 %v2197_v20  ;;  %1890 = vmatpush3.bf16.msra.mxu1 %v2258_v13  ;;  %v316_v20 = vld [vmem:[%s2914_s4] ss:$8 sm:$0x3] }
  0x2d   : > { %602 = vmatprep.subr.bf16.mxu0 %v2198_v21  ;;  %1891 = vmatprep.subr.bf16.mxu1 %v2259_v14  ;;  %v324_v21 = vsub.s32 1, %v319_v18 }
  0x30   : > { %603 = vmatpush1.bf16.msra.mxu0 %v2200_v22  ;;  %1892 = vmatpush3.bf16.msra.mxu1 %v2260_v15  ;;  %v321_v22 = vrot.slane %v316_v20, %v320_v19  ;;  %v2283_v19 = vld [vmem:[%s2913_s3 + $0xb0] sm:$0xff]  }
  0x31   : > { %604 = vmatprep.subr.bf16.mxu0 %v2201_v23  ;;  %1953 = vmatprep.subr.bf16.mxu1 %v2389_v16  ;;  %v325_v23 = vrot.slane %v316_v20, %v324_v21  ;;  %v2284_v20 = vld [vmem:[%s2913_s3 + $0xb8] sm:$0xff]   ;;  %v975_v21 = vld [vmem:[%s2914_s4 + $0x3] ss:$0 sm:$0xff] }
  0x34   : > { %605 = vmatpush1.bf16.msra.mxu0 %v2203_v26 }
  0x35   : > { %606 = vmatprep.subr.bf16.mxu0 %v2204_v30 }
  0x38   : > { %607 = vmatpush1.bf16.msra.mxu0 %v2206_v31 }
  0x39   : > { %608 = vmatprep.subr.bf16.mxu0 %v2207_v34 }
  0x3c   : > { %609 = vmatpush1.bf16.msra.mxu0 %v2209_v35 }
  0x3d   : > { %610 = vmatprep.subr.bf16.mxu0 %v2210_v36 }
  0x40   : > { %611 = vmatpush1.bf16.msra.mxu0 %v2212_v40  ;;  %v2263_v40 = vld [vmem:[%s2913_s3 + $0x10] sm:$0xff]  }
  0x41   : > { %612 = vmatprep.subr.bf16.mxu0 %v2213_v42  ;;  %v2265_v42 = vld [vmem:[%s2913_s3 + $0x20] sm:$0xff]  }
  0x44   : > { %613 = vmatpush1.bf16.msra.mxu0 %v2215_v43  ;;  %v2266_v43 = vld [vmem:[%s2913_s3 + $0x28] sm:$0xff]  }
  0x45   : > { %614 = vmatprep.subr.bf16.mxu0 %v2216_v44  ;;  %v2267_v44 = vld [vmem:[%s2913_s3 + $0x30] sm:$0xff]  }
  0x48   : > { %615 = vmatpush1.bf16.msra.mxu0 %v2218_v45  ;;  %v2268_v45 = vld [vmem:[%s2913_s3 + $0x38] sm:$0xff]  }
  0x49   : > { %627 = vmatprep.subr.bf16.mxu0 %v2221_v48 }
  0x4b   : > { %617 = vmatmul.mubr.bf16.vlgmr.msra.gmra.mrb[0].mxu0 %v263_v52 }
  0x4c   : > { %628 = vmatpush1.bf16.msra.mxu0 %v2219_v51  ;;  %1726 = vmatprep.mubr.msk.bf16.mxu0 %vm573_vm0, %v266_v54 }
  0x4d   : > { %629 = vmatprep.subr.bf16.mxu0 %v2224_v53 }
  0x50   : > { %630 = vmatpush1.bf16.msra.mxu0 %v2222_v55 }
  0x51   : > { %631 = vmatprep.subr.bf16.mxu0 %v2227_v56 }
  0x54   : > { %632 = vmatpush1.bf16.msra.mxu0 %v2225_v57  ;;  %v2269_v57 = vld [vmem:[%s2913_s3 + $0x40] sm:$0xff]  }
  0x55   : > { %633 = vmatprep.subr.bf16.mxu0 %v2230_v58 }
  0x58   : > { %634 = vmatpush1.bf16.msra.mxu0 %v2228_v59  ;;  %v2270_v59 = vld [vmem:[%s2913_s3 + $0x48] sm:$0xff]  }
  0x59   : > { %635 = vmatprep.subr.bf16.mxu0 %v2233_v60  ;;  %v2271_v60 = vld [vmem:[%s2913_s3 + $0x50] sm:$0xff]  }
  0x5c   : > { %636 = vmatpush1.bf16.msra.mxu0 %v2231_v61  ;;  %v2272_v61 = vld [vmem:[%s2913_s3 + $0x58] sm:$0xff]  }
  0x5d   : > { %637 = vmatprep.subr.bf16.mxu0 %v2236_v62  ;;  %v2273_v62 = vld [vmem:[%s2913_s3 + $0x60] sm:$0xff]  }
  0x60   : > { %638 = vmatpush1.bf16.msra.mxu0 %v2234_v63  ;;  %v2274_v63 = vld [vmem:[%s2913_s3 + $0x68] sm:$0xff]  }
  0x61   : > { %639 = vmatprep.subr.bf16.mxu0 %v2239_v0  ;;  %v2275_v0 = vld [vmem:[%s2913_s3 + $0x70] sm:$0xff]  }
  0x64   : > { %640 = vmatpush1.bf16.msra.mxu0 %v2237_v1  ;;  %v2276_v1 = vld [vmem:[%s2913_s3 + $0x78] sm:$0xff]  }
  0x65   : > { %641 = vmatprep.subr.bf16.mxu0 %v2242_v2  ;;  %v2277_v2 = vld [vmem:[%s2913_s3 + $0x80] sm:$0xff]  }
  0x68   : > { %642 = vmatpush1.bf16.msra.mxu0 %v2240_v4  ;;  %v2279_v4 = vld [vmem:[%s2913_s3 + $0x90] sm:$0xff]  }
  0x69   : > { %1725 = vmatprep.subr.msk.bf16.mxu0 %vm577_vm1, %v1724_v5  ;;  %v2280_v5 = vld [vmem:[%s2913_s3 + $0x98] sm:$0xff]  }
  0x6c   : > { %644 = vmatpush1.bf16.msra.mxu0 %v579_v9 }
  0x6d   : > { %2013 = vmatprep.subr.bf16.mxu0 %v2389_v16 }
  0x6f   : > { %660 = vmatmul.mubr.bf16.vlgmr.msra.gmra.mrb[0].mxu0 %v265_v10 }
  0x70   : > { %2029 = vmatprep.mubr.msk.bf16.mxu0 %vm2390_vm2, %v2389_v16  ;;  %2014 = vmatpush3.bf16.msra.mxu0 %v2277_v2 }
  0x71   : > { %2015 = vmatprep.subr.bf16.mxu0 %v2389_v16 }
  0x74   : > { %2016 = vmatpush3.bf16.msra.mxu0 %v2278_v3 }
  0x75   : > { %2017 = vmatprep.subr.bf16.mxu0 %v2389_v16 }
  0x78   : > { %2018 = vmatpush3.bf16.msra.mxu0 %v2279_v4 }
  0x79   : > { %2019 = vmatprep.subr.bf16.mxu0 %v2389_v16 }
  0x7c   : > { %2020 = vmatpush3.bf16.msra.mxu0 %v2280_v5 }
  0x7d   : > { %2021 = vmatprep.subr.bf16.mxu0 %v2389_v16 }
  0x80   : > { %2022 = vmatpush3.bf16.msra.mxu0 %v2281_v6 }
  0x81   : > { %2023 = vmatprep.subr.bf16.mxu0 %v2389_v16 }
  0x84   : > { %2024 = vmatpush3.bf16.msra.mxu0 %v2282_v7 }
  0x85   : > { %2025 = vmatprep.subr.bf16.mxu0 %v2389_v16 }
  0x88   : > { %2026 = vmatpush3.bf16.msra.mxu0 %v2283_v19 }
  0x89   : > { %2027 = vmatprep.subr.bf16.mxu0 %v2389_v16 }
  0x8c   : > { %2028 = vmatpush3.bf16.msra.mxu0 %v2284_v20 }
  0x8d   : > { %2053 = vmatprep.subr.bf16.mxu0 %v2389_v16 }
 0x142   : > { %v661_v24 = vpop.f32.mrb[0].mxu0 }
 0x143   : > { %v2073_v25 = vadd.f32 %v661_v24, %v321_v22  ;;  %v663_v26 = vpop.f32.mrb[1].mxu0 }
 0x144   : > { %v2074_v27 = vadd.f32 %v663_v26, %v325_v23  ;;  %v665_v28 = vpop.f32.mrb[2].mxu0 }
 0x145   : > { %v2075_v29 = vadd.f32 %v665_v28, %v321_v22  ;;  %v667_v30 = vpop.f32.mrb[3].mxu0  ;;  %v670_v32 = vmax.f32 %v2073_v25, 0.0 }
 0x146   : > { %v2076_v31 = vadd.f32 %v667_v30, %v325_v23  ;;  %v671_v34 = vmax.f32 %v2074_v27, 0.0 }
 0x147   : > { %v672_v33 = vmax.f32 %v2075_v29, 0.0 }
 0x148   : > { %v673_v35 = vmax.f32 %v2076_v31, 0.0  ;;  %v2285_v31 = vld [vmem:[%s2913_s3 + $0xc0] sm:$0xff]  }
 0x149   : > { %v674_v36 = vpack.c.bf16 %v672_v33, %v670_v32  ;;  %v2286_v32 = vld [vmem:[%s2913_s3 + $0xc8] sm:$0xff]   ;;  %v2287_v33 = vld [vmem:[%s2913_s3 + $0xd0] sm:$0xff]  }
 0x14a   : > { %v675_v37 = vpack.c.bf16 %v673_v35, %v671_v34  ;;  %v2288_v34 = vld [vmem:[%s2913_s3 + $0xd8] sm:$0xff]   ;;  %v2289_v35 = vld [vmem:[%s2913_s3 + $0xe0] sm:$0xff]  }
 0x14c   : > { %837 = vmatprep.mubr.bf16.mxu1 %v675_v37  ;;  %v1085_v37 = vld [vmem:[%s2914_s4 + $0x4] ss:$0 sm:$0xff] }
 0x14d   : > { %838 = vmatmul.mubr.bf16.vlgmr.msra.gmra.mrb[0].mxu1 %v674_v36  ;;  %v2290_v36 = vld [vmem:[%s2913_s3 + $0xe8] sm:$0xff]  }
 0x14e   : > { %1954 = vmatpush3.bf16.msra.mxu1 %v2261_v38  ;;  %1969 = vmatprep.mubr.msk.bf16.mxu1 %vm2390_vm2, %v2389_v16 }
 0x14f   : > { %1955 = vmatprep.subr.bf16.mxu1 %v2389_v16 }
 0x152   : > { %1956 = vmatpush3.bf16.msra.mxu1 %v2262_v39 }
 0x153   : > { %1957 = vmatprep.subr.bf16.mxu1 %v2389_v16 }
 0x156   : > { %1958 = vmatpush3.bf16.msra.mxu1 %v2263_v40 }
 0x157   : > { %1959 = vmatprep.subr.bf16.mxu1 %v2389_v16 }
 0x15a   : > { %1960 = vmatpush3.bf16.msra.mxu1 %v2264_v41 }
 0x15b   : > { %1961 = vmatprep.subr.bf16.mxu1 %v2389_v16 }
 0x15e   : > { %1962 = vmatpush3.bf16.msra.mxu1 %v2265_v42 }
 0x15f   : > { %1963 = vmatprep.subr.bf16.mxu1 %v2389_v16 }
 0x162   : > { %1964 = vmatpush3.bf16.msra.mxu1 %v2266_v43 }
 0x163   : > { %1965 = vmatprep.subr.bf16.mxu1 %v2389_v16 }
 0x166   : > { %1966 = vmatpush3.bf16.msra.mxu1 %v2267_v44 }
 0x167   : > { %1967 = vmatprep.subr.bf16.mxu1 %v2389_v16 }
 0x16a   : > { %1968 = vmatpush3.bf16.msra.mxu1 %v2268_v45 }
 0x16b   : > { %1973 = vmatprep.subr.bf16.mxu1 %v2389_v16 }
 0x220   : > { %v1893_v46 = vpop.f32.mrb[0].mxu1 }
 0x221   : > { %v1894_v48 = vpop.f32.mrb[1].mxu1 }
 0x222   : > { %v1895_v49 = vadd.f32 %v1894_v48, %v1893_v46  ;;  %v1896_v50 = vpop.f32.mrb[2].mxu1  ;;  %v2292_v48 = vld [vmem:[%s2913_s3 + $0xf8] sm:$0xff]  }
 0x223   : > { %v1897_v51 = vpop.f32.mrb[3].mxu1 }
 0x224   : > { %v840_v52 = vadd.f32 %v1895_v49, %v708_v47  ;;  %v1898_v53 = vadd.f32 %v1897_v51, %v1896_v50  ;;  %v2293_v49 = vld [vmem:[%s2913_s3 + $0x100] sm:$0xff]   ;;  %v2294_v50 = vld [vmem:[%s2913_s3 + $0x108] sm:$0xff]   ;;  %v2295_v51 = vld [vmem:[%s2913_s3 + $0x110] sm:$0xff]  }
 0x226   : > { %v843_v54 = vadd.f32 %v1898_v53, %v708_v47  ;;  %v846_v55 = vmax.f32 %v840_v52, 0.0  ;;  %v2291_v47 = vld [vmem:[%s2913_s3 + $0xf0] sm:$0xff]   ;;  %v2296_v52 = vld [vmem:[%s2913_s3 + $0x118] sm:$0xff]   ;;  %v2297_v53 = vld [vmem:[%s2913_s3 + $0x120] sm:$0xff]  }
 0x228   : > { %v847_v56 = vmax.f32 %v843_v54, 0.0  ;;  %v2298_v54 = vld [vmem:[%s2913_s3 + $0x128] sm:$0xff]  }
 0x22a   : > { %v848_v58 = vpack.c.bf16 %v847_v56, %v846_v55 }
 0x22c   : > { %1970 = vmatmul.mubr.bf16.vlgmr.msra.gmra.mrb[4].mxu1 %v848_v58 }
 0x22d   : > { %1974 = vmatpush3.bf16.msra.mxu1 %v2269_v57  ;;  %1989 = vmatprep.mubr.msk.bf16.mxu1 %vm2390_vm2, %v2389_v16 }
 0x22e   : > { %1975 = vmatprep.subr.bf16.mxu1 %v2389_v16 }
 0x231   : > { %1976 = vmatpush3.bf16.msra.mxu1 %v2270_v59 }
 0x232   : > { %1977 = vmatprep.subr.bf16.mxu1 %v2389_v16 }
 0x235   : > { %1978 = vmatpush3.bf16.msra.mxu1 %v2271_v60 }
 0x236   : > { %1979 = vmatprep.subr.bf16.mxu1 %v2389_v16 }
 0x239   : > { %1980 = vmatpush3.bf16.msra.mxu1 %v2272_v61 }
 0x23a   : > { %1981 = vmatprep.subr.bf16.mxu1 %v2389_v16 }
 0x23d   : > { %1982 = vmatpush3.bf16.msra.mxu1 %v2273_v62 }
 0x23e   : > { %1983 = vmatprep.subr.bf16.mxu1 %v2389_v16 }
 0x241   : > { %1984 = vmatpush3.bf16.msra.mxu1 %v2274_v63 }
 0x242   : > { %1985 = vmatprep.subr.bf16.mxu1 %v2389_v16 }
 0x245   : > { %1986 = vmatpush3.bf16.msra.mxu1 %v2275_v0  ;;  %v2299_v0 = vld [vmem:[%s2913_s3 + $0x130] sm:$0xff]  }
 0x246   : > { %1987 = vmatprep.subr.bf16.mxu1 %v2389_v16 }
 0x249   : > { %1988 = vmatpush3.bf16.msra.mxu1 %v2276_v1  ;;  %v2300_v1 = vld [vmem:[%s2913_s3 + $0x138] sm:$0xff]  }
 0x24a   : > { %1993 = vmatprep.subr.bf16.mxu1 %v2389_v16 }
 0x2ff   : > { %v948_v9 = vpop.f32.mrb[4].mxu1 }
 0x300   : > { %v949_v10 = vadd.f32 %v948_v9, %v865_v8  ;;  %v1971_v11 = vpop.f32.mrb[5].mxu1 }
 0x301   : > { %v951_v12 = vpop.f32.mrb[6].mxu1 }
 0x302   : > { %v952_v13 = vadd.f32 %v951_v12, %v865_v8  ;;  %v1972_v14 = vpop.f32.mrb[7].mxu1  ;;  %v955_v15 = vmax.f32 %v949_v10, 0.0 }
 0x304   : > { %v956_v17 = vmax.f32 %v952_v13, 0.0 }
 0x306   : > { %v957_v18 = vpack.c.bf16 %v956_v17, %v955_v15 }
 0x308   : > { %1990 = vmatmul.mubr.bf16.vlgmr.msra.gmra.mrb[8].mxu1 %v957_v18 }
 0x309   : > { %1994 = vmatpush3.bf16.msra.mxu1 %v2277_v2  ;;  %2009 = vmatprep.mubr.msk.bf16.mxu1 %vm2390_vm2, %v2389_v16  ;;  %v1239_v2 = vld [vmem:[%s2914_s4 + $0x5] ss:$0 sm:$0xff] }
 0x30a   : > { %1995 = vmatprep.subr.bf16.mxu1 %v2389_v16 }
 0x30d   : > { %1996 = vmatpush3.bf16.msra.mxu1 %v2278_v3 }
 0x30e   : > { %1997 = vmatprep.subr.bf16.mxu1 %v2389_v16 }
 0x311   : > { %1998 = vmatpush3.bf16.msra.mxu1 %v2279_v4 }
 0x312   : > { %1999 = vmatprep.subr.bf16.mxu1 %v2389_v16 }
 0x315   : > { %2000 = vmatpush3.bf16.msra.mxu1 %v2280_v5 }
 0x316   : > { %2001 = vmatprep.subr.bf16.mxu1 %v2389_v16 }
 0x319   : > { %2002 = vmatpush3.bf16.msra.mxu1 %v2281_v6 }
 0x31a   : > { %2003 = vmatprep.subr.bf16.mxu1 %v2389_v16 }
 0x31d   : > { %2004 = vmatpush3.bf16.msra.mxu1 %v2282_v7 }
 0x31e   : > { %2005 = vmatprep.subr.bf16.mxu1 %v2389_v16 }
 0x321   : > { %2006 = vmatpush3.bf16.msra.mxu1 %v2283_v19 }
 0x322   : > { %2007 = vmatprep.subr.bf16.mxu1 %v2389_v16 }
 0x325   : > { %2008 = vmatpush3.bf16.msra.mxu1 %v2284_v20 }
 0x326   : > { %2033 = vmatprep.subr.bf16.mxu1 %v2389_v16 }
 0x3db   : > { %v1058_v22 = vpop.f32.mrb[8].mxu1 }
 0x3dc   : > { %v1059_v23 = vadd.f32 %v1058_v22, %v975_v21  ;;  %v1991_v24 = vpop.f32.mrb[9].mxu1 }
 0x3dd   : > { %v1061_v25 = vpop.f32.mrb[10].mxu1 }
 0x3de   : > { %v1062_v26 = vadd.f32 %v1061_v25, %v975_v21  ;;  %v1992_v27 = vpop.f32.mrb[11].mxu1  ;;  %v1065_v28 = vmax.f32 %v1059_v23, 0.0 }
 0x3e0   : > { %v1066_v29 = vmax.f32 %v1062_v26, 0.0 }
 0x3e2   : > { %v1067_v30 = vpack.c.bf16 %v1066_v29, %v1065_v28 }
 0x3e4   : > { %2010 = vmatmul.mubr.bf16.vlgmr.msra.gmra.mrb[12].mxu1 %v1067_v30 }
 0x3e5   : > { %2049 = vmatprep.mubr.msk.bf16.mxu1 %vm2390_vm2, %v2389_v16  ;;  %2034 = vmatpush3.bf16.msra.mxu1 %v2285_v31 }
 0x3e6   : > { %2035 = vmatprep.subr.bf16.mxu1 %v2389_v16 }
 0x3e9   : > { %2036 = vmatpush3.bf16.msra.mxu1 %v2286_v32 }
 0x3ea   : > { %2037 = vmatprep.subr.bf16.mxu1 %v2389_v16 }
 0x3ed   : > { %2038 = vmatpush3.bf16.msra.mxu1 %v2287_v33 }
 0x3ee   : > { %2039 = vmatprep.subr.bf16.mxu1 %v2389_v16 }
 0x3f1   : > { %2040 = vmatpush3.bf16.msra.mxu1 %v2288_v34 }
 0x3f2   : > { %2041 = vmatprep.subr.bf16.mxu1 %v2389_v16 }
 0x3f5   : > { %2042 = vmatpush3.bf16.msra.mxu1 %v2289_v35 }
 0x3f6   : > { %2043 = vmatprep.subr.bf16.mxu1 %v2389_v16 }
 0x3f9   : > { %2044 = vmatpush3.bf16.msra.mxu1 %v2290_v36 }
 0x3fa   : > { %2045 = vmatprep.subr.bf16.mxu1 %v2389_v16 }
 0x3fd   : > { %2046 = vmatpush3.bf16.msra.mxu1 %v2291_v47 }
 0x3fe   : > { %2047 = vmatprep.subr.bf16.mxu1 %v2389_v16 }
 0x401   : > { %2048 = vmatpush3.bf16.msra.mxu1 %v2292_v48 }
 0x4b7   : > { %v1168_v38 = vpop.f32.mrb[12].mxu1 }
 0x4b8   : > { %v1169_v39 = vadd.f32 %v1168_v38, %v1085_v37  ;;  %v2011_v40 = vpop.f32.mrb[13].mxu1 }
 0x4b9   : > { %v1171_v41 = vpop.f32.mrb[14].mxu1 }
 0x4ba   : > { %v1172_v42 = vadd.f32 %v1171_v41, %v1085_v37  ;;  %v2012_v43 = vpop.f32.mrb[15].mxu1  ;;  %v1175_v44 = vmax.f32 %v1169_v39, 0.0 }
 0x4bc   : > { %v1176_v45 = vmax.f32 %v1172_v42, 0.0 }
 0x4be   : > { %v1177_v46 = vpack.c.bf16 %v1176_v45, %v1175_v44 }
 0x4c0   : > { %2030 = vmatmul.mubr.bf16.vlgmr.msra.gmra.mrb[4].mxu0 %v1177_v46 }
 0x4c1   : > { %2069 = vmatprep.mubr.msk.bf16.mxu0 %vm2390_vm2, %v2389_v16  ;;  %2054 = vmatpush3.bf16.msra.mxu0 %v2293_v49 }
 0x4c2   : > { %2055 = vmatprep.subr.bf16.mxu0 %v2389_v16 }
 0x4c5   : > { %2056 = vmatpush3.bf16.msra.mxu0 %v2294_v50 }
 0x4c6   : > { %2057 = vmatprep.subr.bf16.mxu0 %v2389_v16 }
 0x4c9   : > { %2058 = vmatpush3.bf16.msra.mxu0 %v2295_v51 }
 0x4ca   : > { %2059 = vmatprep.subr.bf16.mxu0 %v2389_v16 }
 0x4cd   : > { %2060 = vmatpush3.bf16.msra.mxu0 %v2296_v52 }
 0x4ce   : > { %2061 = vmatprep.subr.bf16.mxu0 %v2389_v16 }
 0x4d1   : > { %2062 = vmatpush3.bf16.msra.mxu0 %v2297_v53 }
 0x4d2   : > { %2063 = vmatprep.subr.bf16.mxu0 %v2389_v16 }
 0x4d5   : > { %2064 = vmatpush3.bf16.msra.mxu0 %v2298_v54 }
 0x4d6   : > { %2065 = vmatprep.subr.bf16.mxu0 %v2389_v16 }
 0x4d9   : > { %2066 = vmatpush3.bf16.msra.mxu0 %v2299_v0 }
 0x4da   : > { %2067 = vmatprep.subr.bf16.mxu0 %v2389_v16  ;;  %v1349_v16 = vld [vmem:[%s2914_s4 + $0x6] ss:$0 sm:$0xff] }
 0x4dd   : > { %2068 = vmatpush3.bf16.msra.mxu0 %v2300_v1 }
 0x593   : > { %v1212_v55 = vpop.f32.mrb[4].mxu0 }
 0x594   : > { %v1213_v56 = vadd.f32 %v1212_v55, %v1085_v37  ;;  %v2031_v57 = vpop.f32.mrb[5].mxu0 }
 0x595   : > { %v1215_v58 = vpop.f32.mrb[6].mxu0 }
 0x596   : > { %v1216_v59 = vadd.f32 %v1215_v58, %v1085_v37  ;;  %v2032_v60 = vpop.f32.mrb[7].mxu0  ;;  %v1219_v61 = vmax.f32 %v1213_v56, 0.0 }
 0x598   : > { %v1220_v62 = vmax.f32 %v1216_v59, 0.0 }
 0x59a   : > { %v1221_v63 = vpack.c.bf16 %v1220_v62, %v1219_v61 }
 0x59c   : > { %2050 = vmatmul.mubr.bf16.vlgmr.msra.gmra.mrb[16].mxu1 %v1221_v63 }
 0x66f   : > { %v1322_v3 = vpop.f32.mrb[16].mxu1 }
 0x670   : > { %v1323_v4 = vadd.f32 %v1322_v3, %v1239_v2  ;;  %v2051_v5 = vpop.f32.mrb[17].mxu1 }
 0x671   : > { %v1325_v6 = vpop.f32.mrb[18].mxu1 }
 0x672   : > { %v1326_v7 = vadd.f32 %v1325_v6, %v1239_v2  ;;  %v2052_v8 = vpop.f32.mrb[19].mxu1  ;;  %v1329_v9 = vmax.f32 %v1323_v4, 0.0 }
 0x674   : > { %v1330_v10 = vmax.f32 %v1326_v7, 0.0 }
 0x676   : > { %v1331_v11 = vpack.c.bf16 %v1330_v10, %v1329_v9 }
 0x678   : > { %2070 = vmatmul.mubr.bf16.vlgmr.msra.gmra.mrb[8].mxu0 %v1331_v11 }
 0x74b   : > { %v1432_v12 = vpop.f32.mrb[8].mxu0 }
 0x74c   : > { %v2071_v13 = vpop.f32.mrb[9].mxu0  ;;  %v1433_v15 = vadd.f32 %v1432_v12, %v1349_v16  ;;  %1455 = sbr.rel (!%p2446_p4) target bundleno = 1924 (0x784), region = 44 }
 0x74d   : > { %v1435_v14 = vpop.f32.mrb[10].mxu0 }
 0x74e   : > { %v1436_v17 = vadd.f32 %v1435_v14, %v1349_v16  ;;  %v2072_v18 = vpop.f32.mrb[11].mxu0 }
 0x750   : > { %v1875_v19 = vpack.c.bf16 %v1436_v17, %v1433_v15 }
 0x752   : > { %1876 = vst [vmem:[%s2866_s29] sm:$0xff] %v1875_v19  }
 0x753   : > { %s2921_s18 = smov (!%p1458_p8, %s1457_s18), 2 }
 0x754   : > { %s1851_s9 = sshll.u32 %s2921_s18, 6 }
 0x755   : > { %p1854_p9 = scmp.eq.s32.totalorder %s1851_s9, 0 }
 0x756   : > { %s2882_s11 = sshrl.u32 (!%p1854_p9), %s2921_s18, 1 }
 0x757   : > { %1466 = sbr.rel (%p1854_p9) target bundleno = 1924 (0x784), region = 48  ;;  %p1855_p10 = scmp.le.s32.totalorder (!%p1854_p9), %s2882_s11, 0 }
 0x75e   : > { %1623 = sbr.rel (%p1855_p10) target bundleno = 1903 (0x76f), region = 124  ;;  %s2357_s21 = smov (!%p1855_p10), %s2876_s8  }
 0x75f   : > { %s2361_s26 = smov (!%p1855_p10), %s2866_s29   ;;  %s2365_s12 = smov (!%p1855_p10), 0  }
 0x760   : > { %s2369_s13 = smov (!%p1855_p10), 0  }
 0x765 LB: >> { %v1482_v20 = vld [vmem:[%s2363_s26] sm:$0xf]  ;;  %v1484_v21 = vld [vmem:[%s2363_s26 + $0x4] sm:$0xf]  ;;  %s1486_s10 = sadd.s32 1, %s2367_s12  ;;  %s1476_s13 = sadd.s32 1, %s2371_s13   ;;  %s2371_s13 = sphi %s2369_s13, %s1476_s13   ;;  %s2367_s12 = sphi %s2365_s12, %s2366_s12   ;;  %s2363_s26 = sphi %s2361_s26, %s1491_s26   ;;  %s2359_s21 = sphi %s2357_s21, %s1492_s21  }
 0x766   : >> { %1483 = vst [vmem:[%s2359_s21] sm:$0xf] %v1482_v20  ;;  %1485 = vst [vmem:[%s2359_s21 + $0x4] sm:$0xf] %v1484_v21  ;;  %p1487_p11 = scmp.ge.s32.totalorder %s1486_s10, %s2882_s11  ;;  %p1475_p12 = scmp.ge.s32.totalorder %s1476_s13, %s2882_s11 }
 0x768   : >> { %s2923_s10 = smov (%p1487_p11, %s1486_s10), 0  ;;  %1478 = sbr.rel (!%p1475_p12) target bundleno = 1893 (0x765), region = 130 }
 0x769   : >> { %s1856_s14 = sshll.u32 %s2923_s10, 3  ;;  %s2366_s12 = smov %s2923_s10  }
 0x76a   : >> { %s1491_s26 = scalar_lea.vmem %s2866_s29, %s1856_s14 [#allocation2]   ;;  %s1492_s21 = scalar_lea.vmem %s2876_s8, %s1856_s14  }
 0x76f PF: > { %s2892_s15 = sand.u32 1, %s2921_s18   ;;  %s1870_s16 = sshll.u32 %s2882_s11, 3 }
 0x770   : > { %s1497_s17 = scalar_lea.vmem %s2866_s29, %s1870_s16 [#allocation2]   ;;  %s1499_s20 = scalar_lea.vmem %s2876_s8, %s1870_s16  }
 0x771   : > { %p1861_p13 = scmp.le.s32.totalorder %s2892_s15, 0 }
 0x772   : > { %s2373_s23 = smov (!%p1861_p13), %s1499_s20   ;;  %s2377_s24 = smov (!%p1861_p13), %s1497_s17  }
 0x773   : > { %1637 = sbr.rel (%p1861_p13) target bundleno = 1924 (0x784), region = 135  ;;  %s2381_s27 = smov (!%p1861_p13), 0  }
 0x774   : > { %s2385_s28 = smov (!%p1861_p13), 0  }
 0x77a LB: >> { %v1509_v22 = vld [vmem:[%s2379_s24] sm:$0xf]  ;;  %s1511_s18 = sadd.s32 1, %s2383_s27  ;;  %s1503_s28 = sadd.s32 1, %s2387_s28   ;;  %s2387_s28 = sphi %s2385_s28, %s1503_s28   ;;  %s2383_s27 = sphi %s2381_s27, %s2382_s27   ;;  %s2379_s24 = sphi %s2377_s24, %s1516_s24   ;;  %s2375_s23 = sphi %s2373_s23, %s1517_s23  }
 0x77b   : >> { %1510 = vst [vmem:[%s2375_s23] sm:$0xf] %v1509_v22  ;;  %p1512_p0 = scmp.ge.s32.totalorder %s1511_s18, %s2892_s15  ;;  %p1502_p1 = scmp.ge.s32.totalorder %s1503_s28, %s2892_s15 }
 0x77d   : >> { %s2925_s18 = smov (%p1512_p0, %s1511_s18), 0  ;;  %1505 = sbr.rel (!%p1502_p1) target bundleno = 1914 (0x77a), region = 141 }
 0x77e   : >> { %s1862_s29 = sshll.u32 %s2925_s18, 2  ;;  %s2382_s27 = smov %s2925_s18  }
 0x77f   : >> { %s1516_s24 = scalar_lea.vmem %s1497_s17, %s1862_s29 [#allocation2]   ;;  %s1517_s23 = scalar_lea.vmem %s1499_s20, %s1862_s29  }
 0x784 PF: > { %p12_p2 = scmp.ge.s32.totalorder %s2436_s22, 4   ;;  %s2917_s18 = smov %s2351_s19 }
 0x785   : > { %s2918_s19 = smov %s2444_s25  ;;  %s2919_s20 = smov %s2436_s22 }
 0x786   :  { %14 = sbr.rel (!%p12_p2) target bundleno = 2 (0x2), region = 152 }

</bundles_post_ra>
